<compile_context>
chip_gen: v6e
topology: v6e:2x2x1
jax: 0.10.0
libtpu: 0.0.40
codegen_flags: <defaults>
</compile_context>

<pallas_src>
import functools

import jax
import jax.numpy as jnp
from jax.experimental import pallas as pl
from jax.experimental.pallas import tpu as pltpu

# ---- small, self-consistent "GPT config" (scaled-down GPT_CONFIG_124M) ----
CFG = dict(
    vocab_size=512,
    context_length=16,
    emb_dim=64,
    n_heads=2,
    n_layers=2,
    drop_rate=0.1,   # eval-mode dropout (identity) for determinism
    qkv_bias=False,
)
EPS = 1e-5


def _round_up(x, m):
    return (x + m - 1) // m * m


def _gpt_fused_kernel(ids_ref, emb_ref, ss_ref, w_ref, out_ref, *,
                      seq_len, vocab_size):
    """Embedding gather+add, final LayerNorm and out_head matmul, fully fused.

    Single gridless invocation, everything resident in VMEM:
      ids_ref: (M, 1)  int32   flattened token ids
      emb_ref: (T, D)  bf16    [tok_emb ; pos_emb ; zero-pad] combined table
      ss_ref:  (2, D)  float32 LayerNorm [scale ; shift]
      w_ref:   (D, V)  bf16    out_head weight (pre-transposed)
      out_ref: (M, V)  float32 logits
    """
    M = ids_ref.shape[0]
    T, D = emb_ref.shape

    # --- fused tok_emb gather + pos_emb add as ONE one-hot MXU matmul ---
    # Row m wants tok_emb[ids[m]] + pos_emb[m % S]; with the tables stacked in
    # emb_ref, a one-hot row with two 1.0 entries does both in one f32-acc dot.
    ids = ids_ref[...]                                               # (M, 1)
    col = jax.lax.broadcasted_iota(jnp.int32, (M, T), 1)
    row = jax.lax.broadcasted_iota(jnp.int32, (M, T), 0)
    pos_col = vocab_size + (row % seq_len)
    onehot = jnp.where((col == ids) | (col == pos_col), 1.0, 0.0)    # f32
    x = jnp.dot(onehot.astype(jnp.bfloat16), emb_ref[...],
                preferred_element_type=jnp.float32)                  # (M, D) f32

    # dropout: eval-mode identity; transformer blocks: identity (no compute).
    # TODO(synk): training-mode dropout (drop_rate=0.1) omitted (eval identity).

    # --- final LayerNorm: one-pass stats, source's exact sqrt(std + eps) ---
    inv_d = 1.0 / D
    s1 = jnp.sum(x, axis=-1, keepdims=True)
    s2 = jnp.sum(x * x, axis=-1, keepdims=True)
    mean = s1 * inv_d
    var = jnp.maximum(s2 * inv_d - mean * mean, 0.0)
    std = jnp.sqrt(var)                                   # unbiased=False std
    norm = (x - mean) * jax.lax.rsqrt(std + EPS)          # divide via EUP rsqrt
    ss = ss_ref[...]
    xn = ss[0:1, :] * norm + ss[1:2, :]

    # bf16 x bf16 -> f32 accumulate on the MXU; one (M, D) @ (D, V) matmul.
    out_ref[...] = jnp.dot(xn.astype(jnp.bfloat16), w_ref[...],
                           preferred_element_type=jnp.float32)


@jax.jit
def dummy_gpt_forward(token_ids, params):
    """token_ids: (B, S) int32 -> logits (B, S, V) float32."""
    B, S = token_ids.shape
    D = CFG["emb_dim"]
    V = CFG["vocab_size"]
    M = B * S

    emb = params["emb"]                 # (T, D) bf16, padded [tok ; pos] table
    T = emb.shape[0]
    ids2d = token_ids.reshape(M, 1).astype(jnp.int32)

    kernel = functools.partial(_gpt_fused_kernel, seq_len=S, vocab_size=V)

    cost = pl.CostEstimate(
        flops=2 * M * T * D + 2 * M * D * V,
        transcendentals=2 * M,
        bytes_accessed=M * 4 + T * D * 2 + 2 * D * 4 + D * V * 2 + M * V * 4,
    )

    logits2d = pl.pallas_call(
        kernel,
        out_shape=jax.ShapeDtypeStruct((M, V), jnp.float32),
        in_specs=[
            pl.BlockSpec(memory_space=pltpu.MemorySpace.VMEM),  # token ids
            pl.BlockSpec(memory_space=pltpu.MemorySpace.VMEM),  # emb table
            pl.BlockSpec(memory_space=pltpu.MemorySpace.VMEM),  # LN scale/shift
            pl.BlockSpec(memory_space=pltpu.MemorySpace.VMEM),  # out_head W
        ],
        out_specs=pl.BlockSpec(memory_space=pltpu.MemorySpace.VMEM),
        cost_estimate=cost,
    )(ids2d, emb, params["scale_shift"], params["w_out"])

    return logits2d.reshape(B, S, V)


def init_params(key):
    """Deterministic parameter init matching the module's shapes."""
    D, V, C = CFG["emb_dim"], CFG["vocab_size"], CFG["context_length"]
    k1, k2, k3 = jax.random.split(key, 3)
    tok_emb = jax.random.normal(k1, (V, D), jnp.float32)   # nn.Embedding(V, D)
    pos_emb = jax.random.normal(k2, (C, D), jnp.float32)   # nn.Embedding(C, D)
    # Combined [tok ; pos] table, zero-padded so the MXU contraction dim is a
    # clean multiple of 128 (pad rows never match the in-kernel one-hot).
    T = _round_up(V + C, 128)
    emb = (jnp.zeros((T, D), jnp.float32)
           .at[:V].set(tok_emb)
           .at[V:V + C].set(pos_emb))
    # nn.Linear(D, V, bias=False): PyTorch weight is (V, D); stored (D, V) bf16.
    w_out = (jax.random.uniform(k3, (V, D), jnp.float32, minval=-1.0, maxval=1.0)
             / jnp.sqrt(D)).T
    return {
        "emb": emb.astype(jnp.bfloat16),
        # LayerNorm: row 0 = scale (ones), row 1 = shift (zeros), packed (2, D).
        "scale_shift": jnp.concatenate(
            [jnp.ones((1, D), jnp.float32), jnp.zeros((1, D), jnp.float32)], 0),
        "w_out": w_out.astype(jnp.bfloat16),
    }


def _reference_forward(token_ids, params):
    """Pure-JAX reference with identical dtypes/semantics (for verification)."""
    B, S = token_ids.shape
    V = CFG["vocab_size"]
    emb = params["emb"].astype(jnp.float32)
    tok = jnp.take(emb[:V], token_ids, axis=0)             # (B, S, D)
    pos = emb[V:V + S][None]                                # (1, S, D)
    x = tok + pos
    mean = jnp.mean(x, axis=-1, keepdims=True)
    std = jnp.sqrt(jnp.mean((x - mean) ** 2, axis=-1, keepdims=True))
    norm = (x - mean) / jnp.sqrt(std + EPS)                 # sqrt(std + eps) quirk
    xn = params["scale_shift"][0] * norm + params["scale_shift"][1]
    w = params["w_out"].astype(jnp.float32)
    return jnp.dot(xn.astype(jnp.bfloat16).astype(jnp.float32), w,
                   precision=jax.lax.Precision.HIGHEST)


if __name__ == "__main__":
    key = jax.random.PRNGKey(0)
    pkey, xkey = jax.random.split(key)
    params = init_params(pkey)

    # Input: (batch=2, seq=8) token ids.
    token_ids = jax.random.randint(
        xkey, (2, 8), minval=0, maxval=CFG["vocab_size"], dtype=jnp.int32
    )

    logits = dummy_gpt_forward(token_ids, params)
    jax.block_until_ready(logits)

    assert logits.shape == (2, 8, CFG["vocab_size"]), logits.shape
    assert logits.dtype == jnp.float32
    assert bool(jnp.all(jnp.isfinite(logits)))

    ref = _reference_forward(token_ids, params)
    max_err = float(jnp.max(jnp.abs(logits - ref)))
    assert max_err < 1e-2, f"max abs error vs reference: {max_err}"

    print("KERNEL_OK")
</pallas_src>

<mosaic_0001>
module attributes {stable_mosaic.version = 11 : i64} {
  func.func @_gpt_fused_kernel(%arg0: memref<16x1xi32, #tpu.memory_space<vmem>>, %arg1: memref<640x64xbf16, #tpu.memory_space<vmem>>, %arg2: memref<2x64xf32, #tpu.memory_space<vmem>>, %arg3: memref<64x512xbf16, #tpu.memory_space<vmem>>, %arg4: memref<16x512xf32, #tpu.memory_space<vmem>>) attributes {dimension_semantics = [], scalar_prefetch = 0 : i64, scratch_operands = 0 : i64, tpu.core_type = #tpu.core_type<tc>} {
    %c0 = arith.constant 0 : index
    %c0_0 = arith.constant 0 : index
    %0 = vector.load %arg0[%c0, %c0_0] : memref<16x1xi32, #tpu.memory_space<vmem>>, vector<16x1xi32>
    %1 = tpu.iota {dimensions = array<i32: 1>} : vector<16x640xi32>
    %2 = tpu.iota {dimensions = array<i32: 0>} : vector<16x640xi32>
    %c8_i32 = arith.constant 8 : i32
    %c0_i32 = arith.constant 0 : i32
    %3 = arith.cmpi eq, %c8_i32, %c0_i32 : i32
    %c1_i32 = arith.constant 1 : i32
    %4 = arith.select %3, %c1_i32, %c8_i32 : i32
    %5 = vector.broadcast %4 : i32 to vector<16x640xi32>
    %6 = arith.remsi %2, %5 : vector<16x640xi32>
    %c0_i32_1 = arith.constant 0 : i32
    %7 = vector.broadcast %c0_i32_1 : i32 to vector<16x640xi32>
    %8 = arith.cmpi ne, %6, %7 : vector<16x640xi32>
    %c0_i32_2 = arith.constant 0 : i32
    %9 = vector.broadcast %c0_i32_2 : i32 to vector<16x640xi32>
    %10 = arith.cmpi slt, %6, %9 : vector<16x640xi32>
    %c0_i32_3 = arith.constant 0 : i32
    %11 = arith.cmpi slt, %4, %c0_i32_3 : i32
    %12 = vector.broadcast %11 : i1 to vector<16x640xi1>
    %13 = vector.broadcast %12 : vector<16x640xi1> to vector<16x640xi1>
    %14 = arith.xori %10, %13 : vector<16x640xi1>
    %15 = arith.andi %14, %8 : vector<16x640xi1>
    %16 = vector.broadcast %4 : i32 to vector<16x640xi32>
    %17 = arith.addi %6, %16 : vector<16x640xi32>
    %18 = arith.select %15, %17, %6 : vector<16x640xi1>, vector<16x640xi32>
    %c512_i32 = arith.constant 512 : i32
    %19 = vector.broadcast %c512_i32 : i32 to vector<16x640xi32>
    %20 = arith.addi %19, %18 : vector<16x640xi32>
    %21 = vector.broadcast %0 : vector<16x1xi32> to vector<16x640xi32>
    %22 = arith.cmpi eq, %1, %21 : vector<16x640xi32>
    %23 = arith.cmpi eq, %1, %20 : vector<16x640xi32>
    %24 = arith.ori %22, %23 : vector<16x640xi1>
    %cst = arith.constant 1.000000e+00 : f32
    %cst_4 = arith.constant 0.000000e+00 : f32
    %25 = vector.broadcast %cst : f32 to vector<16x640xf32>
    %26 = vector.broadcast %cst_4 : f32 to vector<16x640xf32>
    %27 = arith.select %24, %25, %26 : vector<16x640xi1>, vector<16x640xf32>
    %28 = arith.truncf %27 : vector<16x640xf32> to vector<16x640xbf16>
    %c0_5 = arith.constant 0 : index
    %c0_6 = arith.constant 0 : index
    %29 = vector.load %arg1[%c0_5, %c0_6] : memref<640x64xbf16, #tpu.memory_space<vmem>>, vector<640x64xbf16>
    %cst_7 = arith.constant dense<0.000000e+00> : vector<16x64xf32>
    %30 = tpu.matmul %28, %29, %cst_7 {dimension_numbers = #tpu.dot_dimension_numbers<[1], [0], [0], [1], [0, 0, 1, 1], [], []>} : vector<16x640xbf16>, vector<640x64xbf16>, vector<16x64xf32> -> vector<16x64xf32>
    %cst_8 = arith.constant dense<0.000000e+00> : vector<16xf32>
    %31 = vector.multi_reduction <add>, %30, %cst_8 [1] : vector<16x64xf32> to vector<16xf32>
    %32 = vector.shape_cast %31 : vector<16xf32> to vector<16x1xf32>
    %33 = arith.mulf %30, %30 : vector<16x64xf32>
    %cst_9 = arith.constant dense<0.000000e+00> : vector<16xf32>
    %34 = vector.multi_reduction <add>, %33, %cst_9 [1] : vector<16x64xf32> to vector<16xf32>
    %35 = vector.shape_cast %34 : vector<16xf32> to vector<16x1xf32>
    %cst_10 = arith.constant 1.562500e-02 : f32
    %36 = vector.broadcast %cst_10 : f32 to vector<16x1xf32>
    %37 = arith.mulf %32, %36 : vector<16x1xf32>
    %cst_11 = arith.constant 1.562500e-02 : f32
    %38 = vector.broadcast %cst_11 : f32 to vector<16x1xf32>
    %39 = arith.mulf %35, %38 : vector<16x1xf32>
    %40 = arith.mulf %37, %37 : vector<16x1xf32>
    %41 = arith.subf %39, %40 : vector<16x1xf32>
    %cst_12 = arith.constant 0.000000e+00 : f32
    %42 = vector.broadcast %cst_12 : f32 to vector<16x1xf32>
    %43 = arith.maximumf %41, %42 : vector<16x1xf32>
    %44 = math.sqrt %43 : vector<16x1xf32>
    %45 = vector.broadcast %37 : vector<16x1xf32> to vector<16x64xf32>
    %46 = arith.subf %30, %45 : vector<16x64xf32>
    %cst_13 = arith.constant 9.99999974E-6 : f32
    %47 = vector.broadcast %cst_13 : f32 to vector<16x1xf32>
    %48 = arith.addf %44, %47 : vector<16x1xf32>
    %49 = math.rsqrt %48 : vector<16x1xf32>
    %50 = vector.broadcast %49 : vector<16x1xf32> to vector<16x64xf32>
    %51 = arith.mulf %46, %50 : vector<16x64xf32>
    %c0_14 = arith.constant 0 : index
    %c0_15 = arith.constant 0 : index
    %52 = vector.load %arg2[%c0_14, %c0_15] : memref<2x64xf32, #tpu.memory_space<vmem>>, vector<2x64xf32>
    %53 = vector.extract_strided_slice %52 {offsets = [0, 0], sizes = [1, 64], strides = [1, 1]} : vector<2x64xf32> to vector<1x64xf32>
    %54 = vector.broadcast %53 : vector<1x64xf32> to vector<16x64xf32>
    %55 = arith.mulf %54, %51 : vector<16x64xf32>
    %56 = vector.extract_strided_slice %52 {offsets = [1, 0], sizes = [1, 64], strides = [1, 1]} : vector<2x64xf32> to vector<1x64xf32>
    %57 = vector.broadcast %56 : vector<1x64xf32> to vector<16x64xf32>
    %58 = arith.addf %55, %57 : vector<16x64xf32>
    %59 = arith.truncf %58 : vector<16x64xf32> to vector<16x64xbf16>
    %c0_16 = arith.constant 0 : index
    %c0_17 = arith.constant 0 : index
    %60 = vector.load %arg3[%c0_16, %c0_17] : memref<64x512xbf16, #tpu.memory_space<vmem>>, vector<64x512xbf16>
    %cst_18 = arith.constant dense<0.000000e+00> : vector<16x512xf32>
    %61 = tpu.matmul %59, %60, %cst_18 {dimension_numbers = #tpu.dot_dimension_numbers<[1], [0], [0], [1], [0, 0, 1, 1], [], []>} : vector<16x64xbf16>, vector<64x512xbf16>, vector<16x512xf32> -> vector<16x512xf32>
    %c0_19 = arith.constant 0 : index
    %c0_20 = arith.constant 0 : index
    %62 = vector.load %arg4[%c0_19, %c0_20] : memref<16x512xf32, #tpu.memory_space<vmem>>, vector<16x512xf32>
    tpu.vector_store %arg4[%c0_19, %c0_20], %61 {strides = array<i32>} : memref<16x512xf32, #tpu.memory_space<vmem>>, vector<16x512xf32>,
    return
  }
}

</mosaic_0001>

<bundles_post_ra>
// kernel: dummy_gpt_forward.1
= control target key start
LH: loop header
LB: loop body
LE: loop exit
PB: predicated region body
PF: predicated region fallthrough
CT: control target
= control target key end

     0   :  { %v1063_v1 = vmov 0   ;;  %v1064_v35 = vmov 0.0   ;;  %s1302_s0 = inlined_call_operand.vmem [shape: s32[16,1], index: 0, kind: input, shape index: {}]   ;;  %s1303_s1 = inlined_call_operand.vmem [shape: bf16[640,64], index: 1, kind: input, shape index: {}]   ;;  %s1304_s2 = inlined_call_operand.vmem [shape: f32[2,64], index: 2, kind: input, shape index: {}]   ;;  %s1305_s3 = inlined_call_operand.vmem [shape: bf16[64,512], index: 3, kind: input, shape index: {}]   ;;  %s1306_s4 = inlined_call_operand.hbm [shape: f32[16,512], index: 4, kind: output, shape index: {}]  }
   0x1   :  { %v19_v0 = vld [vmem:[%s1302_s0] sm:$0xff]  ;;  %968 = vset.pattern.permute.xlu0 %v1063_v1  ;;  %v20_v2 = vld [vmem:[%s1302_s0 + $0x8] sm:$0xff]  ;;  %v969_v3 = vld [vmem:[%s1303_s1 + $0x78] sm:$0xff]  }
   0x2   :  { %57 = vperm.xlu0 %968, %v19_v0   ;;  %v970_v4 = vld [vmem:[%s1303_s1 + $0x38] sm:$0xff]   ;;  %888 = vmatprep.subr.bf16.mxu0 %v969_v3  ;;  %v973_v7 = vld [vmem:[%s1303_s1 + $0x70] sm:$0xff]   ;;  %v977_v11 = vld [vmem:[%s1303_s1 + $0x68] sm:$0xff]  }
   0x3   :  { %v971_v5 = vld [vmem:[%s1303_s1 + $0xf8] sm:$0xff]   ;;  %889 = vmatpush3.bf16.msra.mxu0 %v970_v4  ;;  %v974_v8 = vld [vmem:[%s1303_s1 + $0x30] sm:$0xff]   ;;  %v978_v12 = vld [vmem:[%s1303_s1 + $0x28] sm:$0xff]  }
   0x4   :  { %v972_v6 = vld [vmem:[%s1303_s1 + $0xb8] sm:$0xff]   ;;  %910 = vmatprep.subr.bf16.mxu1 %v971_v5  ;;  %890 = vmatprep.subr.bf16.mxu0 %v973_v7  ;;  %v975_v9 = vld [vmem:[%s1303_s1 + $0xf0] sm:$0xff]   ;;  %v979_v13 = vld [vmem:[%s1303_s1 + $0xe8] sm:$0xff]  }
   0x5   :  { %911 = vmatpush3.bf16.msra.mxu1 %v972_v6  ;;  %v976_v10 = vld [vmem:[%s1303_s1 + $0xb0] sm:$0xff]   ;;  %v980_v14 = vld [vmem:[%s1303_s1 + $0xa8] sm:$0xff]   ;;  %v981_v15 = vld [vmem:[%s1303_s1 + $0x60] sm:$0xff]  }
   0x6   :  { %60 = vperm.xlu0 %968, %v20_v2   ;;  %912 = vmatprep.subr.bf16.mxu1 %v975_v9  ;;  %v982_v16 = vld [vmem:[%s1303_s1 + $0x20] sm:$0xff]   ;;  %v985_v19 = vld [vmem:[%s1303_s1 + $0x58] sm:$0xff]   ;;  %v989_v23 = vld [vmem:[%s1303_s1 + $0x50] sm:$0xff]  }
   0x7   :  { %891 = vmatpush3.bf16.msra.mxu0 %v974_v8  ;;  %v983_v17 = vld [vmem:[%s1303_s1 + $0xe0] sm:$0xff]   ;;  %v986_v20 = vld [vmem:[%s1303_s1 + $0x18] sm:$0xff]   ;;  %v990_v24 = vld [vmem:[%s1303_s1 + $0x10] sm:$0xff]  }
   0x8   :  { %892 = vmatprep.subr.bf16.mxu0 %v977_v11  ;;  %v984_v18 = vld [vmem:[%s1303_s1 + $0xa0] sm:$0xff]   ;;  %v987_v21 = vld [vmem:[%s1303_s1 + $0xd8] sm:$0xff]   ;;  %v991_v25 = vld [vmem:[%s1303_s1 + $0xd0] sm:$0xff]  }
   0x9   :  { %913 = vmatpush3.bf16.msra.mxu1 %v976_v10  ;;  %v988_v22 = vld [vmem:[%s1303_s1 + $0x98] sm:$0xff]   ;;  %v992_v26 = vld [vmem:[%s1303_s1 + $0x90] sm:$0xff]   ;;  %v993_v27 = vld [vmem:[%s1303_s1 + $0x48] sm:$0xff]  }
   0xa   :  { %914 = vmatprep.subr.bf16.mxu1 %v979_v13  ;;  %v994_v28 = vld [vmem:[%s1303_s1 + $0x8] sm:$0xff]   ;;  %v997_v31 = vld [vmem:[%s1303_s1 + $0x40] sm:$0xff]  }
   0xb   :  { %893 = vmatpush3.bf16.msra.mxu0 %v978_v12  ;;  %v995_v29 = vld [vmem:[%s1303_s1 + $0xc8] sm:$0xff]   ;;  %v998_v32 = vld [vmem:[%s1303_s1] sm:$0xff]  }
   0xc   :  { %894 = vmatprep.subr.bf16.mxu0 %v981_v15  ;;  %v996_v30 = vld [vmem:[%s1303_s1 + $0x88] sm:$0xff]   ;;  %v999_v33 = vld [vmem:[%s1303_s1 + $0xc0] sm:$0xff]  }
   0xd   :  { %915 = vmatpush3.bf16.msra.mxu1 %v980_v14  ;;  %v1000_v34 = vld [vmem:[%s1303_s1 + $0x80] sm:$0xff]  }
   0xe   :  { %916 = vmatprep.subr.bf16.mxu1 %v983_v17 }
   0xf   :  { %895 = vmatpush3.bf16.msra.mxu0 %v982_v16 }
  0x10   :  { %896 = vmatprep.subr.bf16.mxu0 %v985_v19 }
  0x11   :  { %917 = vmatpush3.bf16.msra.mxu1 %v984_v18 }
  0x12   :  { %918 = vmatprep.subr.bf16.mxu1 %v987_v21 }
  0x13   :  { %897 = vmatpush3.bf16.msra.mxu0 %v986_v20 }
  0x14   :  { %898 = vmatprep.subr.bf16.mxu0 %v989_v23 }
  0x15   :  { %919 = vmatpush3.bf16.msra.mxu1 %v988_v22 }
  0x16   :  { %920 = vmatprep.subr.bf16.mxu1 %v991_v25 }
  0x17   :  { %899 = vmatpush3.bf16.msra.mxu0 %v990_v24 }
  0x18   :  { %900 = vmatprep.subr.bf16.mxu0 %v993_v27 }
  0x19   :  { %921 = vmatpush3.bf16.msra.mxu1 %v992_v26 }
  0x1a   :  { %922 = vmatprep.subr.bf16.mxu1 %v995_v29 }
  0x1b   :  { %901 = vmatpush3.bf16.msra.mxu0 %v994_v28 }
  0x1c   :  { %902 = vmatprep.subr.bf16.mxu0 %v997_v31 }
  0x1d   :  { %923 = vmatpush3.bf16.msra.mxu1 %v996_v30 }
  0x1e   :  { %924 = vmatprep.subr.bf16.mxu1 %v999_v33 }
  0x1f   :  { %903 = vmatpush3.bf16.msra.mxu0 %v998_v32 }
  0x20   :  { %941 = vmatprep.subr.bf16.mxu0 %v1064_v35 }
  0x21   :  { %925 = vmatpush3.bf16.msra.mxu1 %v1000_v34 }
  0x22   :  { %9 = vsyncpa [#allocation3], 0  ;;  %v21_v36 = vlaneseq  ;;  %v1001_v43 = vld [vmem:[%s1303_s1 + $0x138] sm:$0xff]   ;;  %v1065_v44 = vmov 1.0|1.0   ;;  %v1002_v45 = vld [vmem:[%s1303_s1 + $0x130] sm:$0xff]  }
  0x23   :  { %vm1066_vm12 = vmmov 0   ;;  %v1003_v46 = vld [vmem:[%s1303_s1 + $0x128] sm:$0xff]   ;;  %v1004_v47 = vld [vmem:[%s1303_s1 + $0x120] sm:$0xff]   ;;  %v1005_v49 = vld [vmem:[%s1303_s1 + $0x118] sm:$0xff]   ;;  %s1067_s22 = smov [#allocation2]  }
  0x24   :  { %v22_v37 = vand.u32 127, %v21_v36  ;;  %v1211_v48 = vshrl.u32 %v21_v36, 7  ;;  %v1006_v51 = vld [vmem:[%s1303_s1 + $0x110] sm:$0xff]   ;;  %v1007_v54 = vld [vmem:[%s1303_s1 + $0x108] sm:$0xff]   ;;  %v1008_v58 = vld [vmem:[%s1303_s1 + $0x100] sm:$0xff]   ;;  %s809_s23 = sshll.u32 %s1067_s22, 4  ;;  %s810_s23 = int_to_ptr.vmem [resolvable:$true] %s809_s23 }
  0x25   :  { %v1009_v22 = vld [vmem:[%s1305_s3 + $0x60] ss:$16 sps:$4 sm:$0xff]   ;;  %v1011_v23 = vld [vmem:[%s1305_s3 + $0x64] ss:$16 sps:$4 sm:$0xff]   ;;  %v1023_v30 = vld [vmem:[%s1305_s3 + $0x6c] ss:$16 sps:$4 sm:$0xff]   ;;  %p1046_p1 = scmp.lt.s32.totalorder %s810_s23, %s810_s23 }
  0x26   :  { %v23_v39 = vadd.s32 128, %v22_v37  ;;  %v25_v40 = vadd.s32 384, %v22_v37  ;;  %v24_v42 = vadd.s32 256, %v22_v37  ;;  %v29_v50 = vadd.s32 8, %v1211_v48  ;;  %v1014_v24 = vld [vmem:[%s1305_s3 + $0x44] ss:$16 sps:$4 sm:$0xff]   ;;  %718 = vmatprep.subr.bf16.mxu1 %v1011_v23 }
  0x27   :  { %v34_v53 = vand.u32 7, %v1211_v48  ;;  %v26_v56 = vadd.s32 512, %v22_v37  ;;  %v1012_v25 = vld [vmem:[%s1305_s3 + $0x40] ss:$16 sps:$4 sm:$0xff]   ;;  %v1017_v26 = vld [vmem:[%s1305_s3 + $0x24] ss:$16 sps:$4 sm:$0xff]  }
  0x28   :  { %v41_v52 = vand.u32 7, %v29_v50  ;;  %v1015_v27 = vld [vmem:[%s1305_s3 + $0x20] ss:$16 sps:$4 sm:$0xff]   ;;  %v1020_v28 = vld [vmem:[%s1305_s3 + $0x4] ss:$16 sps:$4 sm:$0xff]  }
  0x29   :  { %v54_v57 = vadd.s32 512, %v34_v53  ;;  %v1018_v29 = vld [vmem:[%s1305_s3] ss:$16 sps:$4 sm:$0xff]  }
  0x2a   :  { %v55_v55 = vadd.s32 512, %v41_v52 }
  0x2c   :  { %vm81_vm14 = vcmp.eq.s32.totalorder %v26_v56, %v55_v55 }
  0x7d   :  { %v58_v38 = vpop.permute.xlu0 %57 }
  0x7e   :  { %vm63_vm0 = vcmp.eq.s32.totalorder %v23_v39, %v58_v38  ;;  %vm65_vm5 = vcmp.eq.s32.totalorder %v25_v40, %v58_v38  ;;  %vm62_vm8 = vcmp.eq.s32.totalorder %v22_v37, %v58_v38  ;;  %vm64_vm10 = vcmp.eq.s32.totalorder %v24_v42, %v58_v38 }
  0x7f   :  { %vm66_vm15 = vcmp.eq.s32.totalorder %v26_v56, %v58_v38 }
  0x81   :  { %v61_v41 = vpop.permute.xlu0 %60 }
  0x82   :  { %vm68_vm1 = vcmp.eq.s32.totalorder %v23_v39, %v61_v41  ;;  %vm70_vm2 = vcmp.eq.s32.totalorder %v25_v40, %v61_v41  ;;  %vm67_vm3 = vcmp.eq.s32.totalorder %v22_v37, %v61_v41  ;;  %vm69_vm6 = vcmp.eq.s32.totalorder %v24_v42, %v61_v41 }
  0x83   :  { %vm860_vm4 = vmpackc.low %vm68_vm1, %vm63_vm0  ;;  %vm71_vm13 = vcmp.eq.s32.totalorder %v26_v56, %v61_v41  ;;  %vm76_vm0 = vcmp.eq.s32.totalorder %v26_v56, %v54_v57 }
  0x84   :  { %861 = vmatprep.mubr.msk.bf16.mxu0 %vm860_vm4, %v1065_v44  ;;  %vm864_vm7 = vmpackc.low %vm70_vm2, %vm65_vm5  ;;  %vm550_vm4 = vcmask 523264  }
  0x85   :  { %865 = vmatprep.mubr.msk.bf16.mxu1 %vm864_vm7, %v1065_v44  ;;  %vm862_vm9 = vmpackc.low %vm67_vm3, %vm62_vm8 }
  0x86   :  { %863 = vmatmul.mubr.msk.bf16.vlgmr.msra.gmra.mxu0 %vm862_vm9, %v1065_v44  ;;  %vm866_vm11 = vmpackc.low %vm69_vm6, %vm64_vm10 }
  0x87   :  { %867 = vmatmul.mubr.msk.bf16.vlgmr.msra.gmra.mxu1 %vm866_vm11, %v1065_v44  ;;  %942 = vmatpush3.bf16.msra.mxu0 %v1001_v43  ;;  %vm91_vm1 = vmor %vm71_vm13, %vm81_vm14 }
  0x88   :  { %943 = vmatprep.subr.bf16.mxu0 %v1064_v35  ;;  %957 = vmatprep.mubr.msk.bf16.mxu0 %vm1066_vm12, %v1064_v35  ;;  %vm86_vm2 = vmor %vm66_vm15, %vm76_vm0 }
  0x89   :  { %742 = vmatprep.mubr.bf16.mxu1 %v1063_v1  ;;  %vm868_vm3 = vmpackc.low %vm91_vm1, %vm86_vm2  ;;  %719 = vmatpush1.bf16.msra.mxu1 %v1009_v22 }
  0x8a   :  { %720 = vmatprep.subr.bf16.mxu1 %v1014_v24 }
  0x8b   :  { %944 = vmatpush3.bf16.msra.mxu0 %v1002_v45 }
  0x8c   :  { %945 = vmatprep.subr.bf16.mxu0 %v1064_v35 }
  0x8d   :  { %721 = vmatpush1.bf16.msra.mxu1 %v1012_v25 }
  0x8e   :  { %722 = vmatprep.subr.bf16.mxu1 %v1017_v26 }
  0x8f   :  { %946 = vmatpush3.bf16.msra.mxu0 %v1003_v46 }
  0x90   :  { %947 = vmatprep.subr.bf16.mxu0 %v1064_v35 }
  0x91   :  { %723 = vmatpush1.bf16.msra.mxu1 %v1015_v27 }
  0x92   :  { %724 = vmatprep.subr.bf16.mxu1 %v1020_v28 }
  0x93   :  { %948 = vmatpush3.bf16.msra.mxu0 %v1004_v47 }
  0x94   :  { %949 = vmatprep.subr.bf16.mxu0 %v1064_v35 }
  0x95   :  { %725 = vmatpush1.bf16.msra.mxu1 %v1018_v29 }
  0x96   :  { %761 = vmatprep.subr.bf16.mxu1 %v1023_v30 }
  0x97   :  { %950 = vmatpush3.bf16.msra.mxu0 %v1005_v49 }
  0x98   :  { %951 = vmatprep.subr.bf16.mxu0 %v1064_v35 }
  0x9b   :  { %952 = vmatpush3.bf16.msra.mxu0 %v1006_v51 }
  0x9c   :  { %953 = vmatprep.subr.bf16.mxu0 %v1064_v35 }
  0x9f   :  { %954 = vmatpush3.bf16.msra.mxu0 %v1007_v54 }
  0xa0   :  { %955 = vmatprep.subr.bf16.mxu0 %v1064_v35 }
  0xa3   :  { %956 = vmatpush3.bf16.msra.mxu0 %v1008_v58  ;;  %v600_v58 = vsub.s32 0, %v1211_v48 }
  0xa6   :  { %958 = vmatmul.mubr.msk.bf16.vlgmr.msra.gmra.mxu0 %vm868_vm3, %v1065_v44 }
 0x146   :  { %v904_v59 = vpop.f32.mrf.mxu0 }
 0x147   :  { %v926_v60 = vpop.f32.mrf.mxu1 }
 0x148   :  { %v905_v61 = vpop.f32.mrf.mxu0 }
 0x149   :  { %v927_v62 = vpop.f32.mrf.mxu1  ;;  %v906_v2 = vadd.f32 %v905_v61, %v904_v59 }
 0x14a   :  { %v907_v63 = vpop.f32.mrf.mxu0  ;;  %v928_v3 = vadd.f32 %v927_v62, %v926_v60  ;;  %v597_v60 = vld [vmem:[%s1304_s2] sm:$0x3] }
 0x14b   :  { %v929_v0 = vpop.f32.mrf.mxu1 }
 0x14c   :  { %v908_v4 = vpop.f32.mrf.mxu0  ;;  %v503_v8 = vadd.f32 %v928_v3, %v906_v2 }
 0x14d   :  { %v930_v5 = vpop.f32.mrf.mxu1  ;;  %v909_v6 = vadd.f32 %v908_v4, %v907_v63  ;;  %v601_v63 = vrot.slane %v597_v60, %v600_v58 }
 0x14e   :  { %v931_v7 = vadd.f32 %v930_v5, %v929_v0  ;;  %v606_v0 = vsub.s32 1, %v1211_v48  ;;  %v1024_v48 = vld [vmem:[%s1305_s3 + $0x48] ss:$16 sps:$4 sm:$0xff]  }
 0x150   :  { %v506_v12 = vadd.f32 %v931_v7, %v909_v6  ;;  %v607_v6 = vrot.slane %v597_v60, %v606_v0 }
 0x166   :  { %v543_v9 = vpop.f32.mrf.mxu0 }
 0x167   :  { %v1227_v10 = vadd.f32 %v543_v9, %v503_v8 }
 0x168   :  { %v959_v11 = vpop.f32.mrf.mxu0 }
 0x169   :  { %v551_v13 = vsel %vm550_vm4, %v1227_v10, 0.0  ;;  %v557_v14 = vmul.f32 %v1227_v10, %v1227_v10  ;;  %v1021_v11 = vld [vmem:[%s1305_s3 + $0x68] ss:$16 sps:$4 sm:$0xff]  }
 0x16a   :  { %v546_v15 = vpop.f32.mrf.mxu0  ;;  %552 = vadd.xlane.f32.xlu1 %v551_v13  ;;  %v1029_v13 = vld [vmem:[%s1305_s3 + $0x2c] ss:$16 sps:$4 sm:$0xff]  }
 0x16b   :  { %v1233_v16 = vadd.f32 %v546_v15, %v506_v12  ;;  %v559_v17 = vsel %vm550_vm4, %v557_v14, 0.0  ;;  %v1027_v14 = vld [vmem:[%s1305_s3 + $0x28] ss:$16 sps:$4 sm:$0xff]   ;;  %v1032_v15 = vld [vmem:[%s1305_s3 + $0xc] ss:$16 sps:$4 sm:$0xff]  }
 0x16c   :  { %v960_v18 = vpop.f32.mrf.mxu0  ;;  %560 = vadd.xlane.f32.xlu0 %v559_v17 }
 0x16d   :  { %v554_v19 = vsel %vm550_vm4, %v1233_v16, 0.0  ;;  %v558_v20 = vmul.f32 %v1233_v16, %v1233_v16 }
 0x16e   :  { %555 = vadd.xlane.f32.xlu1 %v554_v19 }
 0x16f   :  { %v562_v21 = vsel %vm550_vm4, %v558_v20, 0.0 }
 0x172   :  { %563 = vadd.xlane.f32.xlu1 %v562_v21 }
 0x1f3   :  { %v553_v31 = vpop.xlane.xlu1 %552 }
 0x1f4   :  { %v565_v32 = vmul.f32 0.015625, %v553_v31 }
 0x1f5   :  { %v561_v33 = vpop.xlane.xlu0 %560 }
 0x1f6   :  { %v569_v34 = vmul.f32 %v565_v32, %v565_v32  ;;  %v567_v35 = vmul.f32 0.015625, %v561_v33  ;;  %v589_v61 = vsub.f32 %v1227_v10, %v565_v32  ;;  %v1026_v10 = vld [vmem:[%s1305_s3 + $0x4c] ss:$16 sps:$4 sm:$0xff]  }
 0x1f7   :  { %v556_v36 = vpop.xlane.xlu1 %555 }
 0x1f8   :  { %v571_v37 = vsub.f32 %v567_v35, %v569_v34  ;;  %v566_v38 = vmul.f32 0.015625, %v556_v36 }
 0x1fa   :  { %v573_v39 = vmax.f32 %v571_v37, 0.0  ;;  %v570_v41 = vmul.f32 %v566_v38, %v566_v38  ;;  %v590_v2 = vsub.f32 %v1233_v16, %v566_v38 }
 0x1fb   :  { %v564_v40 = vpop.xlane.xlu1 %563 }
 0x1fc   :  { %1033 = vrsqrt.f32 %v573_v39  ;;  %v568_v42 = vmul.f32 0.015625, %v564_v40  ;;  %vm577_vm5 = vcmp.eq.f32.partialorder %v573_v39, inf  ;;  %v580_v47 = vand.u32 2147483648, %v573_v39 }
 0x1fd   :  { %vm579_vm6 = vcmp.eq.f32.partialorder %v573_v39, 0.0 }
 0x1fe   :  { %v572_v43 = vsub.f32 %v568_v42, %v570_v41 }
 0x200   :  { %v574_v44 = vmax.f32 %v572_v43, 0.0 }
 0x202   :  { %1035 = vrsqrt.f32 %v574_v44  ;;  %vm584_vm7 = vcmp.eq.f32.partialorder %v574_v44, inf  ;;  %v587_v54 = vand.u32 2147483648, %v574_v44  ;;  %vm586_vm8 = vcmp.eq.f32.partialorder %v574_v44, 0.0 }
 0x209   :  { %v1034_v45 = vpop.eup %1033 }
 0x20a   :  { %v576_v46 = vmul.f32 %v1034_v45, %v573_v39 }
 0x20c   :  { %v578_v49 = vsel %vm577_vm5, %v573_v39, %v576_v46 }
 0x20d   :  { %v581_v50 = vsel %vm579_vm6, %v580_v47, %v578_v49 }
 0x20e   :  { %v591_v51 = vadd.f32 1e-05, %v581_v50 }
 0x20f   :  { %v1036_v52 = vpop.eup %1035 }
 0x210   :  { %1037 = vrsqrt.f32 %v591_v51  ;;  %v583_v53 = vmul.f32 %v1036_v52, %v574_v44 }
 0x212   :  { %v585_v55 = vsel %vm584_vm7, %v574_v44, %v583_v53 }
 0x213   :  { %v588_v56 = vsel %vm586_vm8, %v587_v54, %v585_v55 }
 0x214   :  { %v592_v57 = vadd.f32 1e-05, %v588_v56 }
 0x216   :  { %1039 = vrsqrt.f32 %v592_v57 }
 0x21d   :  { %v1038_v59 = vpop.eup %1037 }
 0x21e   :  { %v595_v62 = vmul.f32 %v1038_v59, %v589_v61 }
 0x220   :  { %v602_v5 = vmul.f32 %v601_v63, %v595_v62 }
 0x222   :  { %v608_v8 = vadd.f32 %v607_v6, %v602_v5 }
 0x223   :  { %v1040_v3 = vpop.eup %1039 }
 0x224   :  { %v596_v4 = vmul.f32 %v1040_v3, %v590_v2 }
 0x226   :  { %v603_v7 = vmul.f32 %v601_v63, %v596_v4 }
 0x228   :  { %v609_v9 = vadd.f32 %v607_v6, %v603_v7 }
 0x22a   :  { %v610_v12 = vpack.c.bf16 %v609_v9, %v608_v8 }
 0x22c   :  { %886 = vmatmul.mubr.msk.bf16.vlgmr.msra.gmra.mxu1 %vm550_vm4, %v610_v12 }
 0x22d   :  { %762 = vmatpush1.bf16.msra.mxu1 %v1021_v11  ;;  %785 = vmatprep.mubr.bf16.mxu1 %v1063_v1  ;;  %v1030_v1 = vld [vmem:[%s1305_s3 + $0x8] ss:$16 sps:$4 sm:$0xff]   ;;  %s1041_s3 = scalar_lea.vmem %s810_s23, 1024 }
 0x22e   :  { %763 = vmatprep.subr.bf16.mxu1 %v1026_v10  ;;  %p1042_p0 = scmp.ne.s32.totalorder %s810_s23, %s1041_s3  ;;  %p1047_p2 = scmp.lt.s32.totalorder %s1041_s3, %s1041_s3 }
 0x230   :  { %p1048_p3 = por %p1047_p2, %p1046_p1 }
 0x231   :  { %764 = vmatpush1.bf16.msra.mxu1 %v1024_v48 }
 0x232   :  { %765 = vmatprep.subr.bf16.mxu1 %v1029_v13  ;;  %p1049_p4 = pnand %p1048_p3, %p1042_p0 }
 0x235   :  { %766 = vmatpush1.bf16.msra.mxu1 %v1027_v14 }
 0x236   :  { %767 = vmatprep.subr.bf16.mxu1 %v1032_v15 }
 0x239   :  { %768 = vmatpush1.bf16.msra.mxu1 %v1030_v1 }
 0x23c   :  { %887 = vmatmul.mubr.msk.bf16.vlgmr.msra.gmra.mxu1 %vm550_vm4, %v610_v12 }
 0x2ec   :  { %v744_v16 = vpop.f32.mrf.mxu1 }
 0x2ed   :  { %796 = vst [vmem:[#allocation2] sm:$0xff] %v744_v16 }
 0x2ee   :  { %v746_v17 = vpop.f32.mrf.mxu1 }
 0x2ef   :  { %797 = vst [vmem:[#allocation2 + $0x8] sm:$0xff] %v746_v17 }
 0x2f0   :  { %v748_v18 = vpop.f32.mrf.mxu1 }
 0x2f1   :  { %800 = vst [vmem:[#allocation2 + $0x20] sm:$0xff] %v748_v18 }
 0x2f2   :  { %v750_v19 = vpop.f32.mrf.mxu1 }
 0x2f3   :  { %801 = vst [vmem:[#allocation2 + $0x28] sm:$0xff] %v750_v19 }
 0x2fc   :  { %v787_v20 = vpop.f32.mrf.mxu1 }
 0x2fd   :  { %798 = vst [vmem:[#allocation2 + $0x10] sm:$0xff] %v787_v20 }
 0x2fe   :  { %v789_v21 = vpop.f32.mrf.mxu1 }
 0x2ff   :  { %799 = vst [vmem:[#allocation2 + $0x18] sm:$0xff] %v789_v21 }
 0x300   :  { %v791_v22 = vpop.f32.mrf.mxu1 }
 0x301   :  { %802 = vst [vmem:[#allocation2 + $0x30] sm:$0xff] %v791_v22 }
 0x302   :  { %v793_v23 = vpop.f32.mrf.mxu1 }
 0x303   :  { %803 = vst [vmem:[#allocation2 + $0x38] sm:$0xff] %v793_v23 }
 0x304   :  { %1052 = shalt.err (!%p1049_p4)
}
 0x305   :  { %s1068_s24 = smov 512   ;;  %s1069_s25 = smov 32  }
 0x306   :  { %815 = dma.vmem_to_hbm [thread:$0]  %s810_s23, 1024, %s1306_s4, [#allocation3], %s1068_s24, %s1068_s24, %s1069_s25  }
 0x307   :  { %1061 = dma.done.wait [#allocation3], 1024  }
 0x308   :  { %1062 = vsyncadd [#allocation3], 4294966272 }
 0x309   :  { %819 = vsyncpa [#allocation3], 1 }

</bundles_post_ra>
